<compile_context>
chip_gen: v5e
topology: v5e:2x2
jax: 0.10.0
libtpu: 0.0.40
codegen_flags: <defaults>
</compile_context>

<pallas_src>
import math
import functools

import jax
import jax.numpy as jnp
from jax.experimental import pallas as pl
from jax.experimental.pallas import tpu as pltpu

LANES = 128
SUBLANES = 8
MAX_BLOCK_ROWS = 2048  # 2048*128*4B = 1 MiB per f32 input tile (x2 inputs x2 bufs)


def _wing_loss_kernel(pred_ref, truth_ref, partial_ref, *, w, inv_eps, c):
    # Blocks are (G, 8, 128) in native dtype; cast after load (DMA stays narrow).
    p = pred_ref[...].astype(jnp.float32)
    t = truth_ref[...].astype(jnp.float32)
    ax = jnp.abs(t - p)
    small = w * jnp.log(1.0 + ax * inv_eps)   # |x| < w branch (EUP log)
    large = ax - c                            # otherwise (VPU)
    losses = jnp.where(ax < w, small, large)
    # Reduce only along the leading (non-vreg) axis: pure vreg-wise VPU adds.
    partial_ref[...] = jnp.sum(losses, axis=0, keepdims=True)


def wing_loss(pred, truth, w=10.0, epsilon=2.0):
    assert pred.shape == truth.shape, "pred/truth must have the same shape"
    n = pred.shape[0]  # torch `len(losses)` == size of first dimension

    # Flatten, keep native dtype (no host-side upcast).
    p_flat = jnp.ravel(pred)
    t_flat = jnp.ravel(truth)
    total = p_flat.size

    # Lane-dense layout: rows of 128 lanes, grouped in (8, 128) vreg tiles.
    rows = -(-total // LANES)                               # ceil
    rows8 = ((rows + SUBLANES - 1) // SUBLANES) * SUBLANES  # multiple of 8
    block_rows = min(MAX_BLOCK_ROWS, rows8)
    num_blocks = -(-rows8 // block_rows)
    padded_rows = num_blocks * block_rows
    padded_total = padded_rows * LANES

    pad = padded_total - total
    if pad:
        # Zero-pad BOTH operands: x=0 -> wing loss contribution is exactly 0.
        p_flat = jnp.pad(p_flat, (0, pad))
        t_flat = jnp.pad(t_flat, (0, pad))

    grp = block_rows // SUBLANES  # (8,128) groups per grid step
    p3 = p_flat.reshape(padded_rows // SUBLANES, SUBLANES, LANES)
    t3 = t_flat.reshape(padded_rows // SUBLANES, SUBLANES, LANES)

    c = w * (1.0 - math.log(1.0 + w / epsilon))

    partials = pl.pallas_call(
        functools.partial(_wing_loss_kernel, w=w, inv_eps=1.0 / epsilon, c=c),
        out_shape=jax.ShapeDtypeStruct((num_blocks, SUBLANES, LANES), jnp.float32),
        grid=(num_blocks,),
        in_specs=[
            pl.BlockSpec((grp, SUBLANES, LANES), lambda i: (i, 0, 0)),
            pl.BlockSpec((grp, SUBLANES, LANES), lambda i: (i, 0, 0)),
        ],
        out_specs=pl.BlockSpec((1, SUBLANES, LANES), lambda i: (i, 0, 0)),
        compiler_params=pltpu.CompilerParams(
            dimension_semantics=("parallel",),
        ),
    )(p3, t3)

    # Tiny epilogue reduction (XLU work hoisted out of the pipelined loop).
    return jnp.sum(partials) / (n * 1.0)


def _reference_wing_loss(pred, truth, w=10.0, epsilon=2.0):
    # Pure-JAX reference for sanity checking.
    x = jnp.asarray(truth, jnp.float32) - jnp.asarray(pred, jnp.float32)
    c = w * (1.0 - math.log(1.0 + w / epsilon))
    ax = jnp.abs(x)
    losses = jnp.where(w > ax, w * jnp.log(1.0 + ax / epsilon), ax - c)
    return jnp.sum(losses) / (x.shape[0] * 1.0)


if __name__ == "__main__":
    key = jax.random.PRNGKey(0)
    k1, k2 = jax.random.split(key)

    # Small shapes consistent with landmark-regression usage: (B, C, H, W)
    B, C, H, W = 2, 4, 16, 16
    pred = jax.random.normal(k1, (B, C, H, W), dtype=jnp.float32) * 5.0
    truth = jax.random.normal(k2, (B, C, H, W), dtype=jnp.float32) * 5.0

    out = jax.block_until_ready(wing_loss(pred, truth))
    ref = _reference_wing_loss(pred, truth)
    assert jnp.allclose(out, ref, rtol=1e-5, atol=1e-5), (out, ref)

    # Exercise the zero-padding path (odd, non-128-multiple size, both branches).
    k3, k4 = jax.random.split(k2)
    pred2 = jax.random.normal(k3, (2, 7, 13), dtype=jnp.float32) * 20.0
    truth2 = jax.random.normal(k4, (2, 7, 13), dtype=jnp.float32) * 20.0
    out2 = jax.block_until_ready(wing_loss(pred2, truth2))
    ref2 = _reference_wing_loss(pred2, truth2)
    assert jnp.allclose(out2, ref2, rtol=1e-5, atol=1e-5), (out2, ref2)

    print("KERNEL_OK")
</pallas_src>

<mosaic_0001>
module attributes {stable_mosaic.version = 11 : i64} {
  func.func @_wing_loss_kernel(%arg0: i32, %arg1: memref<2x8x128xf32, #tpu.memory_space<vmem>>, %arg2: memref<2x8x128xf32, #tpu.memory_space<vmem>>, %arg3: memref<1x8x128xf32, #tpu.memory_space<vmem>>) attributes {dimension_semantics = [#tpu.dimension_semantics<parallel>], iteration_bounds = array<i64: 1>, scalar_prefetch = 0 : i64, scratch_operands = 0 : i64, tpu.core_type = #tpu.core_type<tc>, window_params = [{transform_indices = @transform_0, window_bounds = array<i64: 2, 8, 128>}, {transform_indices = @transform_1, window_bounds = array<i64: 2, 8, 128>}, {transform_indices = @transform_2, window_bounds = array<i64: 1, 8, 128>}]} {
    %c0 = arith.constant 0 : index
    %c0_0 = arith.constant 0 : index
    %c0_1 = arith.constant 0 : index
    %0 = vector.load %arg1[%c0, %c0_0, %c0_1] : memref<2x8x128xf32, #tpu.memory_space<vmem>>, vector<2x8x128xf32>
    %c0_2 = arith.constant 0 : index
    %c0_3 = arith.constant 0 : index
    %c0_4 = arith.constant 0 : index
    %1 = vector.load %arg2[%c0_2, %c0_3, %c0_4] : memref<2x8x128xf32, #tpu.memory_space<vmem>>, vector<2x8x128xf32>
    %2 = arith.subf %1, %0 : vector<2x8x128xf32>
    %3 = math.absf %2 : vector<2x8x128xf32>
    %cst = arith.constant 5.000000e-01 : f32
    %4 = vector.broadcast %cst : f32 to vector<2x8x128xf32>
    %5 = arith.mulf %3, %4 : vector<2x8x128xf32>
    %cst_5 = arith.constant 1.000000e+00 : f32
    %6 = vector.broadcast %cst_5 : f32 to vector<2x8x128xf32>
    %7 = arith.addf %6, %5 : vector<2x8x128xf32>
    %8 = math.log %7 : vector<2x8x128xf32>
    %cst_6 = arith.constant 1.000000e+01 : f32
    %9 = vector.broadcast %cst_6 : f32 to vector<2x8x128xf32>
    %10 = arith.mulf %9, %8 : vector<2x8x128xf32>
    %cst_7 = arith.constant -7.9175949 : f32
    %11 = vector.broadcast %cst_7 : f32 to vector<2x8x128xf32>
    %12 = arith.subf %3, %11 : vector<2x8x128xf32>
    %cst_8 = arith.constant 1.000000e+01 : f32
    %13 = vector.broadcast %cst_8 : f32 to vector<2x8x128xf32>
    %14 = arith.cmpf olt, %3, %13 : vector<2x8x128xf32>
    %15 = arith.select %14, %10, %12 : vector<2x8x128xi1>, vector<2x8x128xf32>
    %cst_9 = arith.constant dense<0.000000e+00> : vector<8x128xf32>
    %16 = vector.multi_reduction <add>, %15, %cst_9 [0] : vector<2x8x128xf32> to vector<8x128xf32>
    %17 = vector.shape_cast %16 : vector<8x128xf32> to vector<1x8x128xf32>
    %c0_10 = arith.constant 0 : index
    %c0_11 = arith.constant 0 : index
    %c0_12 = arith.constant 0 : index
    %18 = vector.load %arg3[%c0_10, %c0_11, %c0_12] : memref<1x8x128xf32, #tpu.memory_space<vmem>>, vector<1x8x128xf32>
    tpu.vector_store %arg3[%c0_10, %c0_11, %c0_12], %17 {strides = array<i32>} : memref<1x8x128xf32, #tpu.memory_space<vmem>>, vector<1x8x128xf32>,
    return
  }
  func.func @transform_0(%arg0: i32) -> (i32, i32, i32) {
    %c0_i32 = arith.constant 0 : i32
    %c0_i32_0 = arith.constant 0 : i32
    %c0_i32_1 = arith.constant 0 : i32
    return %arg0, %c0_i32, %c0_i32_0 : i32, i32, i32
  }
  func.func @transform_1(%arg0: i32) -> (i32, i32, i32) {
    %c0_i32 = arith.constant 0 : i32
    %c0_i32_0 = arith.constant 0 : i32
    %c0_i32_1 = arith.constant 0 : i32
    return %arg0, %c0_i32, %c0_i32_0 : i32, i32, i32
  }
  func.func @transform_2(%arg0: i32) -> (i32, i32, i32) {
    %c0_i32 = arith.constant 0 : i32
    %c0_i32_0 = arith.constant 0 : i32
    %c0_i32_1 = arith.constant 0 : i32
    return %arg0, %c0_i32, %c0_i32_0 : i32, i32, i32
  }
}

</mosaic_0001>

<bundles_post_ra>
// kernel: tpu_custom_call.1
= control target key start
LH: loop header
LB: loop body
LE: loop exit
PB: predicated region body
PF: predicated region fallthrough
CT: control target
= control target key end

     0   :  { %7 = vsyncpa [#allocation3], 0  ;;  %s206_s0 = inlined_call_operand.hbm [shape: f32[2,8,128], index: 0, kind: input, shape index: {}]   ;;  %s207_s1 = inlined_call_operand.hbm [shape: f32[2,8,128], index: 1, kind: input, shape index: {}]   ;;  %s208_s2 = inlined_call_operand.hbm [shape: f32[1,8,128], index: 2, kind: output, shape index: {}]  }
   0x1   :  { %8 = vsyncpa [#allocation6], 0 }
   0x2   :  { %9 = vsyncpa [#allocation4], 0  ;;  %s14_s11 = sshll.u32 %s206_s0, 4  ;;  %s177_s12 = smov [#allocation2]   ;;  %s15_s11 = int_to_ptr.hbm [resolvable:$true] %s14_s11 }
   0x3   :  { %s16_s13 = sshll.u32 %s177_s12, 4  ;;  %s27_s16 = sshll.u32 %s207_s1, 4  ;;  %s17_s13 = int_to_ptr.vmem [resolvable:$true] %s16_s13  ;;  %s28_s16 = int_to_ptr.hbm [resolvable:$true] %s27_s16 }
   0x4   :  { %s178_s17 = smov 128   ;;  %s179_s18 = smov 8  }
   0x5   :  { %22 = dma.hbm_to_vmem [thread:$0]  %s15_s11, 256, %s17_s13, [#allocation3], %s178_s17, %s178_s17, %s179_s18  }
   0x6   :  { %s180_s19 = smov [#allocation5]  }
   0x7   :  { %s29_s20 = sshll.u32 %s180_s19, 4  ;;  %s30_s20 = int_to_ptr.vmem [resolvable:$true] %s29_s20 }
   0x8   :  { %35 = dma.hbm_to_vmem [thread:$0]  %s28_s16, 256, %s30_s20, [#allocation6], %s178_s17, %s178_s17, %s179_s18  }
   0x9   :  { %171 = dma.done.wait [#allocation3], 256  }
   0xa   :  { %172 = vsyncadd [#allocation3], 4294967040 }
   0xb   :  { %173 = dma.done.wait [#allocation6], 256  }
   0xc   :  { %174 = vsyncadd [#allocation6], 4294967040  ;;  %v44_v0 = vld [vmem:[#allocation2] sm:$0xff]  ;;  %v45_v1 = vld [vmem:[#allocation2 + $0x8] sm:$0xff]  ;;  %s181_s0 = smov [#allocation7]   ;;  %s77_s23 = sshll.u32 %s208_s2, 4  ;;  %s78_s23 = int_to_ptr.hbm [resolvable:$true] %s77_s23 }
   0xd   :  { %v46_v2 = vld [vmem:[#allocation5] sm:$0xff]  ;;  %v47_v3 = vld [vmem:[#allocation5 + $0x8] sm:$0xff]  ;;  %s75_s1 = sshll.u32 %s181_s0, 4  ;;  %s76_s1 = int_to_ptr.vmem [resolvable:$true] %s75_s1 }
   0xe   :  { %v48_v4 = vsub.f32 %v46_v2, %v44_v0  ;;  %v49_v5 = vsub.f32 %v47_v3, %v45_v1 }
  0x10   :  { %v50_v6 = vand.u32 2147483647, %v48_v4  ;;  %v51_v7 = vand.u32 2147483647, %v49_v5 }
  0x12   :  { %v52_v8 = vmul.f32 0.5, %v50_v6  ;;  %v53_v9 = vmul.f32 0.5, %v51_v7  ;;  %v88_v15 = vadd.f32 7.917595, %v50_v6  ;;  %v89_v17 = vadd.f32 7.917595, %v51_v7 }
  0x13   :  { %vm64_vm0 = vcmp.lt.f32.partialorder %v50_v6, 10.0  ;;  %vm65_vm1 = vcmp.lt.f32.partialorder %v51_v7, 10.0 }
  0x14   :  { %v54_v10 = vadd.f32 1.0, %v52_v8  ;;  %v55_v11 = vadd.f32 1.0, %v53_v9 }
  0x16   :  { %95 = vlog2.f32 %v54_v10 }
  0x17   :  { %97 = vlog2.f32 %v55_v11 }
  0x1c   :  { %v96_v12 = vpop.eup %95 }
  0x1d   :  { %v98_v13 = vpop.eup %97  ;;  %v57_v14 = vmul.f32 0.6931472, %v96_v12 }
  0x1e   :  { %v59_v16 = vmul.f32 0.6931472, %v98_v13 }
  0x1f   :  { %v60_v18 = vmul.f32 10.0, %v57_v14 }
  0x20   :  { %v61_v19 = vmul.f32 10.0, %v59_v16 }
  0x21   :  { %v66_v20 = vsel %vm64_vm0, %v60_v18, %v88_v15 }
  0x22   :  { %v67_v21 = vsel %vm65_vm1, %v61_v19, %v89_v17 }
  0x23   :  { %v68_v22 = vadd.f32 %v67_v21, %v66_v20 }
  0x25   :  { %69 = vst [vmem:[#allocation7] sm:$0xff] %v68_v22 }
  0x26   :  { %80 = dma.vmem_to_hbm [thread:$0]  %s76_s1, 128, %s78_s23, [#allocation4]  }
  0x27   :  { %175 = dma.done.wait [#allocation4], 128  }
  0x28   :  { %176 = vsyncadd [#allocation4], 4294967168 }
  0x29   :  { %85 = vsyncpa [#allocation3], 1 }
  0x2a   :  { %86 = vsyncpa [#allocation6], 1 }
  0x2b   :  { %87 = vsyncpa [#allocation4], 1 }

</bundles_post_ra>
